<compile_context>
chip_gen: v7x
topology: tpu7x:2x2x1
jax: 0.10.0
libtpu: 0.0.40
codegen_flags: <defaults>
</compile_context>

<pallas_src>
from functools import partial

import jax
import jax.numpy as jnp
from jax.experimental import pallas as pl
from jax.experimental.pallas import tpu as pltpu

_SUBLANE = 8
_MAX_TILE_ROWS = 8192  # ~24 MiB VMEM with lane padding; fits 32 MiB scoped VMEM


def _iou_loss_kernel(x_ref, y_ref, out_ref):
    """x_ref, y_ref: (tile_rows, 36) f32; out_ref: (tile_rows, 1) f32 loss."""
    x = x_ref[...]
    y = y_ref[...]
    mn = jnp.minimum(x, y)
    mx = jnp.maximum(x, y)
    inter = jnp.sum(mn * mn, axis=-1, keepdims=True)   # (tile_rows, 1), XLU lane reduce
    union = jnp.sum(mx * mx, axis=-1, keepdims=True)   # (tile_rows, 1)
    out_ref[...] = -jnp.log(inter / union)


def _round_up(x: int, m: int) -> int:
    return ((x + m - 1) // m) * m


def _choose_tile_rows(n: int) -> int:
    """Rows per grid step.

    Small N -> single block.  Larger N -> at least 2 balanced grid steps so both
    of v7x's TensorCores get work, capped at the VMEM-sized maximum tile.
    """
    n = max(int(n), 1)
    if n <= 4096:
        return _round_up(n, _SUBLANE)
    half = _round_up(-(-n // 2), 256)
    return min(_MAX_TILE_ROWS, half)


@partial(jax.jit, static_argnums=(2,))
def _mask_iou_loss_impl(inp, tgt, reduction):
    n, d = inp.shape
    x = jnp.asarray(inp, jnp.float32)
    y = jnp.asarray(tgt, jnp.float32)

    tile_rows = _choose_tile_rows(n)
    grid = (pl.cdiv(n, tile_rows),)

    per_sample = pl.pallas_call(
        _iou_loss_kernel,
        out_shape=jax.ShapeDtypeStruct((n, 1), jnp.float32),
        grid_spec=pltpu.PrefetchScalarGridSpec(
            num_scalar_prefetch=0,
            grid=grid,
            in_specs=[
                pl.BlockSpec((tile_rows, d), lambda i: (i, 0)),
                pl.BlockSpec((tile_rows, d), lambda i: (i, 0)),
            ],
            out_specs=pl.BlockSpec((tile_rows, 1), lambda i: (i, 0)),
        ),
        compiler_params=pltpu.CompilerParams(
            dimension_semantics=("parallel",),
            vmem_limit_bytes=32 * 1024 * 1024,
        ),
        cost_estimate=pl.CostEstimate(
            flops=6 * n * d,                      # min, max, 2 mul, 2 add per element
            transcendentals=2 * n,                # log + reciprocal per sample
            bytes_accessed=(2 * n * d + n) * 4,
        ),
    )(x, y)

    loss = per_sample[:, 0]
    if reduction == "mean":
        return jnp.mean(loss)
    if reduction == "sum":
        return jnp.sum(loss)
    return loss


def mask_iou_loss_with_distance(inp, tgt, reduction: str = "mean"):
    """JAX/Pallas equivalent of MaskIoULossWithDistance.forward.

    inp, tgt: [N, D] arrays (D = 36 in the original module).
    """
    assert inp.shape == tgt.shape and inp.ndim == 2
    return _mask_iou_loss_impl(inp, tgt, reduction)


def _reference(inp, tgt, reduction="mean"):
    """Pure-JAX reference mirroring the PyTorch forward."""
    inter = jnp.sum(jnp.minimum(inp, tgt) ** 2, axis=1)
    union = jnp.sum(jnp.maximum(inp, tgt) ** 2, axis=1)
    loss = -jnp.log(inter / union)
    if reduction == "mean":
        return loss.mean()
    elif reduction == "sum":
        return loss.sum()
    return loss


if __name__ == "__main__":
    key = jax.random.PRNGKey(0)
    k1, k2, k3, k4 = jax.random.split(key, 4)

    # Small shape consistent with the module: N=8 samples, 36 distances each.
    N, D = 8, 36
    # torch.rand -> uniform (0, 1); keep values strictly positive for log().
    inp = jax.random.uniform(k1, (N, D), dtype=jnp.float32, minval=1e-3, maxval=1.0)
    tgt = jax.random.uniform(k2, (N, D), dtype=jnp.float32, minval=1e-3, maxval=1.0)

    loss_mean = jax.block_until_ready(mask_iou_loss_with_distance(inp, tgt, "mean"))
    loss_sum = jax.block_until_ready(mask_iou_loss_with_distance(inp, tgt, "sum"))
    loss_none = jax.block_until_ready(mask_iou_loss_with_distance(inp, tgt, "none"))

    assert jnp.allclose(loss_mean, _reference(inp, tgt, "mean"), rtol=1e-5, atol=1e-5)
    assert jnp.allclose(loss_sum, _reference(inp, tgt, "sum"), rtol=1e-5, atol=1e-5)
    assert jnp.allclose(loss_none, _reference(inp, tgt, "none"), rtol=1e-5, atol=1e-5)

    # N not a multiple of the sublane width (8) exercises the ragged last-block
    # path (out-of-bounds rows are computed on garbage but dropped on the
    # masked write-back, so valid samples are unaffected).
    N2 = 1003
    inp2 = jax.random.uniform(k3, (N2, D), dtype=jnp.float32, minval=1e-3, maxval=1.0)
    tgt2 = jax.random.uniform(k4, (N2, D), dtype=jnp.float32, minval=1e-3, maxval=1.0)
    got_mean = jax.block_until_ready(mask_iou_loss_with_distance(inp2, tgt2, "mean"))
    got_none = jax.block_until_ready(mask_iou_loss_with_distance(inp2, tgt2, "none"))
    assert jnp.allclose(got_mean, _reference(inp2, tgt2, "mean"), rtol=1e-5, atol=1e-5)
    assert jnp.allclose(got_none, _reference(inp2, tgt2, "none"), rtol=1e-5, atol=1e-5)

    print("KERNEL_OK")
</pallas_src>

<mosaic_0001>
module attributes {stable_mosaic.version = 11 : i64} {
  func.func @_iou_loss_kernel(%arg0: i32, %arg1: memref<8x36xf32, #tpu.memory_space<vmem>>, %arg2: memref<8x36xf32, #tpu.memory_space<vmem>>, %arg3: memref<8x1xf32, #tpu.memory_space<vmem>>) attributes {dimension_semantics = [#tpu.dimension_semantics<parallel>], iteration_bounds = array<i64: 1>, scalar_prefetch = 0 : i64, scratch_operands = 0 : i64, tpu.core_type = #tpu.core_type<tc>, window_params = [{transform_indices = @transform_0, window_bounds = array<i64: 8, 36>}, {transform_indices = @transform_1, window_bounds = array<i64: 8, 36>}, {transform_indices = @transform_2, window_bounds = array<i64: 8, 1>}]} {
    %c0 = arith.constant 0 : index
    %c0_0 = arith.constant 0 : index
    %0 = vector.load %arg1[%c0, %c0_0] : memref<8x36xf32, #tpu.memory_space<vmem>>, vector<8x36xf32>
    %c0_1 = arith.constant 0 : index
    %c0_2 = arith.constant 0 : index
    %1 = vector.load %arg2[%c0_1, %c0_2] : memref<8x36xf32, #tpu.memory_space<vmem>>, vector<8x36xf32>
    %2 = arith.minimumf %0, %1 : vector<8x36xf32>
    %3 = arith.maximumf %0, %1 : vector<8x36xf32>
    %4 = arith.mulf %2, %2 : vector<8x36xf32>
    %cst = arith.constant dense<0.000000e+00> : vector<8xf32>
    %5 = vector.multi_reduction <add>, %4, %cst [1] : vector<8x36xf32> to vector<8xf32>
    %6 = vector.shape_cast %5 : vector<8xf32> to vector<8x1xf32>
    %7 = arith.mulf %3, %3 : vector<8x36xf32>
    %cst_3 = arith.constant dense<0.000000e+00> : vector<8xf32>
    %8 = vector.multi_reduction <add>, %7, %cst_3 [1] : vector<8x36xf32> to vector<8xf32>
    %9 = vector.shape_cast %8 : vector<8xf32> to vector<8x1xf32>
    %10 = arith.divf %6, %9 : vector<8x1xf32>
    %11 = math.log %10 : vector<8x1xf32>
    %cst_4 = arith.constant 0.000000e+00 : f32
    %12 = vector.broadcast %cst_4 : f32 to vector<8x1xf32>
    %13 = arith.subf %12, %11 : vector<8x1xf32>
    %c0_5 = arith.constant 0 : index
    %c0_6 = arith.constant 0 : index
    %14 = vector.load %arg3[%c0_5, %c0_6] : memref<8x1xf32, #tpu.memory_space<vmem>>, vector<8x1xf32>
    tpu.vector_store %arg3[%c0_5, %c0_6], %13 {strides = array<i32>} : memref<8x1xf32, #tpu.memory_space<vmem>>, vector<8x1xf32>,
    return
  }
  func.func @transform_0(%arg0: i32) -> (i32, i32) {
    %c0_i32 = arith.constant 0 : i32
    %c0_i32_0 = arith.constant 0 : i32
    return %arg0, %c0_i32 : i32, i32
  }
  func.func @transform_1(%arg0: i32) -> (i32, i32) {
    %c0_i32 = arith.constant 0 : i32
    %c0_i32_0 = arith.constant 0 : i32
    return %arg0, %c0_i32 : i32, i32
  }
  func.func @transform_2(%arg0: i32) -> (i32, i32) {
    %c0_i32 = arith.constant 0 : i32
    %c0_i32_0 = arith.constant 0 : i32
    return %arg0, %c0_i32 : i32, i32
  }
}

</mosaic_0001>

<bundles_post_ra>
// kernel: _mask_iou_loss_impl.1
= control target key start
LH: loop header
LB: loop body
LE: loop exit
PB: predicated region body
PF: predicated region fallthrough
CT: control target
= control target key end

     0   :  { %7 = vsyncpa [#allocation3], 0  ;;  %s159_s0 = inlined_call_operand.hbm [shape: f32[8,36], index: 0, kind: input, shape index: {}]   ;;  %s160_s1 = inlined_call_operand.hbm [shape: f32[8,36], index: 1, kind: input, shape index: {}]   ;;  %s161_s2 = inlined_call_operand.vmem [shape: f32[8,1], index: 2, kind: output, shape index: {}]  }
   0x1   :  { %8 = vsyncpa [#allocation5], 0  ;;  %s115_s9 = smov [#allocation2]   ;;  %s116_s11 = smov [#allocation4]  }
   0x2   :  { %s15_s10 = sshll.u32 %s115_s9, 4  ;;  %s25_s12 = sshll.u32 %s116_s11, 4  ;;  %s16_s10 = int_to_ptr.vmem [resolvable:$true] %s15_s10  ;;  %s26_s12 = int_to_ptr.vmem [resolvable:$true] %s25_s12 }
   0x3   :  { %s67_s15 = scalar_lea.hbm %s159_s0, 128 }
   0x4   :  { %p68_p0 = scmp.ne.s32.totalorder %s159_s0, %s67_s15  ;;  %p71_p1 = scmp.lt.u32.totalorder %s67_s15, %s159_s0 }
   0x6   :  { %p73_p2 = pnand %p71_p1, %p68_p0 }
   0x8   :  { %76 = shalt.err (!%p73_p2)
}
   0x9   :  { %s77_s20 = scalar_lea.vmem %s16_s10, 128  ;;  %p82_p4 = scmp.lt.s32.totalorder %s16_s10, %s16_s10 }
   0xa   :  { %p78_p3 = scmp.ne.s32.totalorder %s16_s10, %s77_s20  ;;  %p83_p5 = scmp.lt.s32.totalorder %s77_s20, %s77_s20 }
   0xc   :  { %p84_p6 = por %p83_p5, %p82_p4 }
   0xe   :  { %p85_p7 = pnand %p84_p6, %p78_p3 }
  0x10   :  { %88 = shalt.err (!%p85_p7)
}
  0x11   :  { %18 = dma.hbm_to_vmem [thread:$0]  %s159_s0, 128, %s16_s10, [#allocation3]  }
  0x12   :  { %s89_s25 = scalar_lea.hbm %s160_s1, 128 }
  0x13   :  { %p90_p8 = scmp.ne.s32.totalorder %s160_s1, %s89_s25  ;;  %p93_p9 = scmp.lt.u32.totalorder %s89_s25, %s160_s1 }
  0x15   :  { %p95_p10 = pnand %p93_p9, %p90_p8 }
  0x17   :  { %98 = shalt.err (!%p95_p10)
}
  0x18   :  { %s99_s30 = scalar_lea.vmem %s26_s12, 128  ;;  %p104_p12 = scmp.lt.s32.totalorder %s26_s12, %s26_s12 }
  0x19   :  { %p100_p11 = scmp.ne.s32.totalorder %s26_s12, %s99_s30  ;;  %p105_p13 = scmp.lt.s32.totalorder %s99_s30, %s99_s30 }
  0x1b   :  { %p106_p0 = por %p105_p13, %p104_p12 }
  0x1d   :  { %p107_p1 = pnand %p106_p0, %p100_p11 }
  0x1f   :  { %110 = shalt.err (!%p107_p1)
}
  0x20   :  { %28 = dma.hbm_to_vmem [thread:$0]  %s160_s1, 128, %s26_s12, [#allocation5]  }
  0x21   :  { %111 = dma.done.wait [#allocation3], 128  }
  0x22   :  { %112 = vsyncadd [#allocation3], 4294967168 }
  0x23   :  { %113 = dma.done.wait [#allocation5], 128  }
  0x24   :  { %114 = vsyncadd [#allocation5], 4294967168  ;;  %v35_v0 = vld [vmem:[#allocation2] sm:$0xff]  ;;  %v36_v1 = vld [vmem:[#allocation4] sm:$0xff]  ;;  %vm40_vm0 = vcmask 293888   ;;  %vm53_vm1 = vcmask 7168  }
  0x25   :  { %v38_v2 = vmax.f32 %v35_v0, %v36_v1  ;;  %v37_v3 = vmin.f32 %v35_v0, %v36_v1 }
  0x27   :  { %v44_v4 = vmul.f32 %v38_v2, %v38_v2  ;;  %v39_v5 = vmul.f32 %v37_v3, %v37_v3 }
  0x29   :  { %v45_v6 = vsel %vm40_vm0, %v44_v4, 0.0  ;;  %v41_v7 = vsel %vm40_vm0, %v39_v5, 0.0 }
  0x2a   :  { %46 = vadd.xlane.f32.xlu0 %v45_v6 }
  0x2e   :  { %42 = vadd.xlane.f32.xlu0 %v41_v7 }
  0xb7   :  { %v47_v8 = vpop.xlane.xlu0 %46 }
  0xb8   :  { %63 = vrcp.f32 %v47_v8 }
  0xbb   :  { %v43_v9 = vpop.xlane.xlu0 %42 }
  0xc2   :  { %v64_v10 = vpop.eup %63 }
  0xc3   :  { %v49_v11 = vmul.f32 %v64_v10, %v43_v9 }
  0xc5   :  { %65 = vlog2.f32 %v49_v11 }
  0xcf   :  { %v66_v12 = vpop.eup %65 }
  0xd0   :  { %v51_v13 = vmul.f32 0.6931472, %v66_v12 }
  0xd2   :  { %v52_v14 = vsub.f32 0.0, %v51_v13 }
  0xd4   :  { %54 = vst.msk [vmem:[%s161_s2] sm:$0xff] %vm53_vm1, %v52_v14 }
  0xd5   :  { %59 = vsyncpa [#allocation3], 1 }
  0xd6   :  { %60 = vsyncpa [#allocation5], 1 }

</bundles_post_ra>
